<compile_context>
chip_gen: v6e
topology: v6e:2x2x1
jax: 0.10.0
libtpu: 0.0.40
codegen_flags: <defaults>
</compile_context>

<pallas_src>
import math

import jax
import jax.numpy as jnp
import numpy as np
from jax import lax
from jax.experimental import pallas as pl
from jax.experimental.pallas import tpu as pltpu

P_DROP = 0.1
_KEEP_SCALE = 1.0 / (1.0 - P_DROP)
# Drop iff (hash & 0x7FFFFFFF) < _DROP_THRESH  =>  P(drop) == P_DROP (to within 2^-31).
_DROP_THRESH = int(round(P_DROP * float(2 ** 31)))


def _pe_dropout_kernel(seed_ref, x_ref, pe_ref, o_ref):
    # x_ref / o_ref: (tS, B*D) ; pe_ref: (tS, D) ; seed_ref: (1,) int32 (SMEM prefetch).
    tS, BD = x_ref.shape
    D = pe_ref.shape[1]
    B = BD // D

    x = x_ref[...]
    pe = pe_ref[...]
    if B > 1:
        pe = jnp.tile(pe, (1, B))            # broadcast pe over batch along the lane axis
    y = x + pe

    # ---- counter-based stateless PRNG (murmur3-style finalizer), pure VPU int ops ----
    rows_i = lax.broadcasted_iota(jnp.int32, (tS, BD), 0) + pl.program_id(0) * tS
    cols_i = lax.broadcasted_iota(jnp.int32, (tS, BD), 1)
    rows = rows_i.astype(jnp.uint32)
    cols = cols_i.astype(jnp.uint32)
    seed = seed_ref[0].astype(jnp.uint32)

    h = seed ^ (rows * jnp.uint32(0x9E3779B1)) ^ (cols * jnp.uint32(0x85EBCA77))
    h = h ^ (h >> jnp.uint32(16))
    h = h * jnp.uint32(0x85EBCA6B)
    h = h ^ (h >> jnp.uint32(13))
    h = h * jnp.uint32(0xC2B2AE35)
    h = h ^ (h >> jnp.uint32(16))

    # Compare in the signed 31-bit range (still uniform after masking the top bit).
    r = (h & jnp.uint32(0x7FFFFFFF)).astype(jnp.int32)
    keep = (r >= jnp.int32(_DROP_THRESH)).astype(jnp.float32)

    # Single fused multiply: out = (x + pe) * keep * 1/(1-p)
    o_ref[...] = (y * (keep * jnp.float32(_KEEP_SCALE))).astype(o_ref.dtype)


def make_positional_encoding_table(demb: int, max_len: int = 5000) -> jnp.ndarray:
    """Deterministic parameter setup, identical to the PyTorch __init__ (plain JAX glue)."""
    position = jnp.arange(max_len, dtype=jnp.float32)[:, None]            # (max_len, 1)
    div_term = jnp.exp(
        jnp.arange(0, demb, 2, dtype=jnp.float32) * -(math.log(10000.0) / demb)
    )                                                                      # (demb/2,)
    pe = jnp.zeros((max_len, 1, demb), dtype=jnp.float32)
    pe = pe.at[:, 0, 0::2].set(jnp.sin(position * div_term))
    pe = pe.at[:, 0, 1::2].set(jnp.cos(position * div_term))
    return pe


def _choose_seq_tile(S: int, row_bytes: int, target_bytes: int = 1 << 20) -> int:
    """~1 MiB x-blocks: big enough to hit HBM roofline, small enough for v7x VMEM."""
    target_rows = max(1, target_bytes // max(row_bytes, 1))
    if target_rows >= S:
        return S                         # single full block (allowed even if S % 8 != 0)
    return max(8, (target_rows // 8) * 8)  # multiple of 8 sublanes for f32 tiles


def positional_encoding_forward(x: jnp.ndarray, pe: jnp.ndarray, seed: int = 0) -> jnp.ndarray:
    """x: (S, B, D) float32 ; pe: (max_len, 1, D). Returns dropout(x + pe[:S])."""
    S, B, D = x.shape
    BD = B * D
    x2 = x.reshape(S, BD)                 # lane-folded, row-major -> free layout plumbing
    pe2 = pe[:S, 0, :]                    # (S, D); keep pe un-broadcast in HBM
    seed_arr = jnp.asarray([seed], dtype=jnp.int32)

    tS = _choose_seq_tile(S, BD * 4)
    grid = (pl.cdiv(S, tS),)

    grid_spec = pltpu.PrefetchScalarGridSpec(
        num_scalar_prefetch=1,
        grid=grid,
        in_specs=[
            pl.BlockSpec((tS, BD), lambda i, seed_ref: (i, 0)),
            pl.BlockSpec((tS, D), lambda i, seed_ref: (i, 0)),
        ],
        out_specs=pl.BlockSpec((tS, BD), lambda i, seed_ref: (i, 0)),
    )

    cost = pl.CostEstimate(
        flops=12 * S * BD,                            # add + mask + scale + hash mixing
        transcendentals=0,
        bytes_accessed=4 * (2 * S * BD + S * D),      # x read + out write + pe read
    )

    out2 = pl.pallas_call(
        _pe_dropout_kernel,
        out_shape=jax.ShapeDtypeStruct((S, BD), x.dtype),
        grid_spec=grid_spec,
        compiler_params=pltpu.CompilerParams(
            dimension_semantics=("parallel",),        # let v7x shard the loop over 2 TCs
            vmem_limit_bytes=32 * 1024 * 1024,
        ),
        cost_estimate=cost,
    )(seed_arr, x2, pe2)

    return out2.reshape(S, B, D)


if __name__ == "__main__":
    # Small shapes consistent with the module's forward: (seq, batch, demb)
    S, B, D = 8, 2, 32
    key = jax.random.PRNGKey(0)
    x = jax.random.normal(key, (S, B, D), dtype=jnp.float32)

    pe = make_positional_encoding_table(demb=D, max_len=64)

    out = positional_encoding_forward(x, pe, seed=0)
    out = jax.block_until_ready(out)

    # Sanity check: every output element is either 0 (dropped) or (x + pe)/(1-p) (kept),
    # and the drop fraction is plausibly ~p.
    y_ref = np.asarray(x) + np.asarray(pe[:S])          # (S, B, D) via broadcast
    out_np = np.asarray(out)
    scaled = y_ref / (1.0 - P_DROP)

    is_zero = np.isclose(out_np, 0.0, atol=1e-6)
    is_scaled = np.isclose(out_np, scaled, rtol=1e-5, atol=1e-5)
    assert np.all(is_zero | is_scaled), "output must be 0 (dropped) or (x+pe)/(1-p) (kept)"

    ambiguous = np.isclose(scaled, 0.0, atol=1e-6)      # elements where both states coincide
    dropped = is_zero & ~ambiguous
    denom = max(1, out_np.size - int(ambiguous.sum()))
    drop_frac = float(dropped.sum()) / denom
    assert 0.0 <= drop_frac < 0.3, f"unexpected drop fraction {drop_frac}"

    assert out.shape == (S, B, D) and out.dtype == jnp.float32

    print("KERNEL_OK")
</pallas_src>

<mosaic_0001>
module attributes {stable_mosaic.version = 11 : i64} {
  func.func @_pe_dropout_kernel(%arg0: i32, %arg1: memref<1xi32, #tpu.memory_space<smem>>, %arg2: memref<8x64xf32, #tpu.memory_space<vmem>>, %arg3: memref<8x32xf32, #tpu.memory_space<vmem>>, %arg4: memref<8x64xf32, #tpu.memory_space<vmem>>) attributes {dimension_semantics = [#tpu.dimension_semantics<parallel>], iteration_bounds = array<i64: 1>, scalar_prefetch = 1 : i64, scratch_operands = 0 : i64, tpu.core_type = #tpu.core_type<tc>, window_params = [{transform_indices = @transform_0, window_bounds = array<i64: 8, 64>}, {transform_indices = @transform_1, window_bounds = array<i64: 8, 32>}, {transform_indices = @transform_2, window_bounds = array<i64: 8, 64>}]} {
    %c0 = arith.constant 0 : index
    %c0_0 = arith.constant 0 : index
    %0 = vector.load %arg2[%c0, %c0_0] : memref<8x64xf32, #tpu.memory_space<vmem>>, vector<8x64xf32>
    %c0_1 = arith.constant 0 : index
    %c0_2 = arith.constant 0 : index
    %1 = vector.load %arg3[%c0_1, %c0_2] : memref<8x32xf32, #tpu.memory_space<vmem>>, vector<8x32xf32>
    %2 = tpu.concatenate %1, %1 in 1 : vector<8x32xf32>, vector<8x32xf32> -> vector<8x64xf32>
    %3 = arith.addf %0, %2 : vector<8x64xf32>
    %4 = tpu.iota {dimensions = array<i32: 0>} : vector<8x64xi32>
    %c8_i32 = arith.constant 8 : i32
    %5 = arith.muli %arg0, %c8_i32 : i32
    %6 = vector.broadcast %5 : i32 to vector<8x64xi32>
    %7 = arith.addi %4, %6 : vector<8x64xi32>
    %8 = tpu.iota {dimensions = array<i32: 1>} : vector<8x64xi32>
    %c0_3 = arith.constant 0 : index
    %9 = memref.load %arg1[%c0_3] : memref<1xi32, #tpu.memory_space<smem>>
    %c-1640531535_i32 = arith.constant -1640531535 : i32
    %10 = vector.broadcast %c-1640531535_i32 : i32 to vector<8x64xi32>
    %11 = arith.muli %7, %10 : vector<8x64xi32>
    %12 = vector.broadcast %9 : i32 to vector<8x64xi32>
    %13 = arith.xori %12, %11 : vector<8x64xi32>
    %c-2048144777_i32 = arith.constant -2048144777 : i32
    %14 = vector.broadcast %c-2048144777_i32 : i32 to vector<8x64xi32>
    %15 = arith.muli %8, %14 : vector<8x64xi32>
    %16 = arith.xori %13, %15 : vector<8x64xi32>
    %c16_i32 = arith.constant 16 : i32
    %17 = vector.broadcast %c16_i32 : i32 to vector<8x64xi32>
    %18 = arith.shrui %16, %17 : vector<8x64xi32>
    %19 = arith.xori %16, %18 : vector<8x64xi32>
    %c-2048144789_i32 = arith.constant -2048144789 : i32
    %20 = vector.broadcast %c-2048144789_i32 : i32 to vector<8x64xi32>
    %21 = arith.muli %19, %20 : vector<8x64xi32>
    %c13_i32 = arith.constant 13 : i32
    %22 = vector.broadcast %c13_i32 : i32 to vector<8x64xi32>
    %23 = arith.shrui %21, %22 : vector<8x64xi32>
    %24 = arith.xori %21, %23 : vector<8x64xi32>
    %c-1028477387_i32 = arith.constant -1028477387 : i32
    %25 = vector.broadcast %c-1028477387_i32 : i32 to vector<8x64xi32>
    %26 = arith.muli %24, %25 : vector<8x64xi32>
    %c16_i32_4 = arith.constant 16 : i32
    %27 = vector.broadcast %c16_i32_4 : i32 to vector<8x64xi32>
    %28 = arith.shrui %26, %27 : vector<8x64xi32>
    %29 = arith.xori %26, %28 : vector<8x64xi32>
    %c2147483647_i32 = arith.constant 2147483647 : i32
    %30 = vector.broadcast %c2147483647_i32 : i32 to vector<8x64xi32>
    %31 = arith.andi %29, %30 : vector<8x64xi32>
    %c214748365_i32 = arith.constant 214748365 : i32
    %32 = vector.broadcast %c214748365_i32 : i32 to vector<8x64xi32>
    %33 = arith.cmpi sge, %31, %32 : vector<8x64xi32>
    %34 = arith.extui %33 : vector<8x64xi1> to vector<8x64xi32>
    %35 = arith.sitofp %34 : vector<8x64xi32> to vector<8x64xf32>
    %cst = arith.constant 1.11111116 : f32
    %36 = vector.broadcast %cst : f32 to vector<8x64xf32>
    %37 = arith.mulf %35, %36 : vector<8x64xf32>
    %38 = arith.mulf %3, %37 : vector<8x64xf32>
    %c0_5 = arith.constant 0 : index
    %c0_6 = arith.constant 0 : index
    %39 = vector.load %arg4[%c0_5, %c0_6] : memref<8x64xf32, #tpu.memory_space<vmem>>, vector<8x64xf32>
    tpu.vector_store %arg4[%c0_5, %c0_6], %38 {strides = array<i32>} : memref<8x64xf32, #tpu.memory_space<vmem>>, vector<8x64xf32>,
    return
  }
  func.func @transform_0(%arg0: i32, %arg1: memref<1xi32, #tpu.memory_space<smem>>) -> (i32, i32) {
    %c0_i32 = arith.constant 0 : i32
    %c0_i32_0 = arith.constant 0 : i32
    return %arg0, %c0_i32 : i32, i32
  }
  func.func @transform_1(%arg0: i32, %arg1: memref<1xi32, #tpu.memory_space<smem>>) -> (i32, i32) {
    %c0_i32 = arith.constant 0 : i32
    %c0_i32_0 = arith.constant 0 : i32
    return %arg0, %c0_i32 : i32, i32
  }
  func.func @transform_2(%arg0: i32, %arg1: memref<1xi32, #tpu.memory_space<smem>>) -> (i32, i32) {
    %c0_i32 = arith.constant 0 : i32
    %c0_i32_0 = arith.constant 0 : i32
    return %arg0, %c0_i32 : i32, i32
  }
}

</mosaic_0001>

<bundles_post_ra>
// kernel: tpu_custom_call.1
= control target key start
LH: loop header
LB: loop body
LE: loop exit
PB: predicated region body
PF: predicated region fallthrough
CT: control target
= control target key end

     0   :  { %9 = vsyncpa [#allocation5], 0  ;;  %s201_s0 = inlined_call_operand.<no memory space> [shape: s32[1], index: 0, kind: input, shape index: {}]   ;;  %s202_s1 = inlined_call_operand.hbm [shape: f32[8,64], index: 1, kind: input, shape index: {}]   ;;  %s203_s2 = inlined_call_operand.hbm [shape: f32[8,32], index: 2, kind: input, shape index: {}]   ;;  %s204_s3 = inlined_call_operand.hbm [shape: f32[8,64], index: 3, kind: output, shape index: {}]  }
   0x1   :  { %10 = vsyncpa [#allocation8], 0 }
   0x2   :  { %11 = vsyncpa [#allocation6], 0  ;;  %s164_s12 = smov [#allocation4]   ;;  %s165_s14 = smov [#allocation7]  }
   0x3   :  { %s18_s13 = sshll.u32 %s164_s12, 4  ;;  %s28_s15 = sshll.u32 %s165_s14, 4  ;;  %s19_s13 = int_to_ptr.vmem [resolvable:$true] %s18_s13  ;;  %s29_s15 = int_to_ptr.vmem [resolvable:$true] %s28_s15 }
   0x4   :  { %s106_s16 = scalar_lea.vmem %s19_s13, 128  ;;  %p111_p1 = scmp.lt.s32.totalorder %s19_s13, %s19_s13 }
   0x5   :  { %p107_p0 = scmp.ne.s32.totalorder %s19_s13, %s106_s16  ;;  %p112_p2 = scmp.lt.s32.totalorder %s106_s16, %s106_s16 }
   0x7   :  { %p113_p3 = por %p112_p2, %p111_p1 }
   0x9   :  { %p114_p4 = pnand %p113_p3, %p107_p0 }
   0xb   :  { %117 = shalt.err (!%p114_p4)
}
   0xc   :  { %21 = dma.hbm_to_vmem [thread:$0]  %s202_s1, 128, %s19_s13, [#allocation5]  }
   0xd   :  { %s126_s19 = scalar_lea.vmem %s29_s15, 128  ;;  %p131_p6 = scmp.lt.s32.totalorder %s29_s15, %s29_s15 }
   0xe   :  { %p127_p5 = scmp.ne.s32.totalorder %s29_s15, %s126_s19  ;;  %p132_p7 = scmp.lt.s32.totalorder %s126_s19, %s126_s19 }
  0x10   :  { %p133_p8 = por %p132_p7, %p131_p6 }
  0x12   :  { %p134_p9 = pnand %p133_p8, %p127_p5 }
  0x14   :  { %137 = shalt.err (!%p134_p9)
}
  0x15   :  { %31 = dma.hbm_to_vmem [thread:$0]  %s203_s2, 128, %s29_s15, [#allocation8]  }
  0x16   :  { %158 = dma.done.wait [#allocation5], 128  }
  0x17   :  { %159 = vsyncadd [#allocation5], 4294967168 }
  0x18   :  { %160 = dma.done.wait [#allocation8], 128  }
  0x19   :  { %161 = vsyncadd [#allocation8], 4294967168  ;;  %v39_v0 = vld [vmem:[#allocation7] sm:$0xff]  ;;  %s166_s22 = smov 32   ;;  %v47_v1 = vlaneseq  ;;  %v56_v5 = vstv %s201_s0  ;;  %v167_v18 = vmov 0.0   ;;  %vm44_vm1 = vcmask 261120  }
  0x1a   :  { %41 = vrot.lane.b32.xlu0 %v39_v0, %s166_s22  ;;  %v38_v20 = vld [vmem:[#allocation4] sm:$0xff]  ;;  %s168_s0 = smov [#allocation9]   ;;  %vm74_vm2 = vcmask 523264  }
  0x1b   :  { %v48_v2 = vshrl.u32 %v47_v1, 7  ;;  %v53_v3 = vand.u32 127, %v47_v1  ;;  %s82_s2 = sshll.u32 %s168_s0, 4  ;;  %s83_s2 = int_to_ptr.vmem [resolvable:$true] %s82_s2 }
  0x1c   :  { %s138_s24 = scalar_lea.vmem %s83_s2, 128  ;;  %p143_p11 = scmp.lt.s32.totalorder %s83_s2, %s83_s2 }
  0x1d   :  { %v55_v4 = vmul.u32 2654435761, %v48_v2  ;;  %v58_v7 = vmul.u32 2246822519, %v53_v3  ;;  %p139_p10 = scmp.ne.s32.totalorder %s83_s2, %s138_s24  ;;  %p144_p12 = scmp.lt.s32.totalorder %s138_s24, %s138_s24 }
  0x1f   :  { %v57_v6 = vxor.u32 %v56_v5, %v55_v4  ;;  %p145_p13 = por %p144_p12, %p143_p11 }
  0x21   :  { %v59_v8 = vxor.u32 %v58_v7, %v57_v6  ;;  %p146_p0 = pnand %p145_p13, %p139_p10 }
  0x23   :  { %v60_v9 = vshrl.u32 %v59_v8, 16 }
  0x25   :  { %v61_v10 = vxor.u32 %v60_v9, %v59_v8 }
  0x27   :  { %v62_v11 = vmul.u32 2246822507, %v61_v10 }
  0x29   :  { %v63_v12 = vshrl.u32 %v62_v11, 13 }
  0x2b   :  { %v64_v13 = vxor.u32 %v63_v12, %v62_v11 }
  0x2d   :  { %v65_v14 = vmul.u32 3266489909, %v64_v13 }
  0x2f   :  { %v66_v15 = vshrl.u32 %v65_v14, 16 }
  0x31   :  { %v67_v16 = vxor.u32 %v66_v15, %v65_v14 }
  0x33   :  { %v68_v17 = vand.u32 2147483647, %v67_v16 }
  0x35   :  { %vm69_vm0 = vcmp.ge.s32.totalorder %v68_v17, 214748365 }
  0x36   :  { %v92_v19 = vsel %vm69_vm0, 1.0, %v167_v18 }
  0x37   :  { %v72_v22 = vmul.f32 1.1111112, %v92_v19 }
  0x8c   :  { %v42_v21 = vpop.permute.xlu0 %41 }
  0x8d   :  { %v45_v23 = vsel %vm44_vm1, %v39_v0, %v42_v21 }
  0x8e   :  { %v46_v24 = vadd.f32 %v45_v23, %v38_v20 }
  0x90   :  { %v73_v25 = vmul.f32 %v72_v22, %v46_v24 }
  0x92   :  { %75 = vst.msk [vmem:[#allocation9] sm:$0xff] %vm74_vm2, %v73_v25 }
  0x93   :  { %149 = shalt.err (!%p146_p0)
}
  0x94   :  { %85 = dma.vmem_to_hbm [thread:$0]  %s83_s2, 128, %s204_s3, [#allocation6]  }
  0x95   :  { %162 = dma.done.wait [#allocation6], 128  }
  0x96   :  { %163 = vsyncadd [#allocation6], 4294967168 }
  0x97   :  { %89 = vsyncpa [#allocation5], 1 }
  0x98   :  { %90 = vsyncpa [#allocation8], 1 }
  0x99   :  { %91 = vsyncpa [#allocation6], 1 }

</bundles_post_ra>
